<compile_context>
chip_gen: v7x
topology: tpu7x:2x2x1
jax: 0.10.0
libtpu: 0.0.40
codegen_flags: <defaults>
</compile_context>

<pallas_src>
import functools

import jax
import jax.numpy as jnp
from jax.experimental import pallas as pl
from jax.experimental.pallas import tpu as pltpu


def _round_up(v, m):
    return (v + m - 1) // m * m


def _linear_kernel(x_ref, w_ref, b_ref, o_ref, *acc_refs, use_act):
    # x_ref: (tm, tk) bf16   w_ref: (tk, tn) bf16   b_ref: (1, tn) f32
    # o_ref: (tm, tn)        acc_refs: () for f32 output (accumulate into o_ref),
    #                                  (f32 (tm, tn) scratch,) otherwise.
    acc_ref = acc_refs[0] if acc_refs else o_ref
    k = pl.program_id(2)

    @pl.when(k == 0)
    def _():
        acc_ref[...] = jnp.zeros_like(acc_ref)

    # Plain MXU matmul: W is already (K, N) in HBM, so no per-tile transpose.
    acc_ref[...] += jnp.dot(x_ref[...], w_ref[...], preferred_element_type=jnp.float32)

    # Bias + activation exactly once, after the full K reduction.
    @pl.when(k == pl.num_programs(2) - 1)
    def _():
        out = acc_ref[...] + b_ref[...]
        if use_act:
            out = jnp.maximum(out, 0.0)
        o_ref[...] = out.astype(o_ref.dtype)


def _vmem_cap_bytes():
    """Generation-aware VMEM cap: ~56 MiB on v7x (64 MiB), ~100 MiB on v5e/v6e (128 MiB)."""
    cap_physical = 128 * 1024 * 1024
    try:
        cap_physical = int(pltpu.get_tpu_info().vmem_capacity_bytes)
    except Exception:
        pass
    return min((cap_physical * 7) // 8, 100 * 1024 * 1024)


def linear_layer(x, weight, bias=None, act_func="relu", *,
                 tm=512, tn=512, tk=1024, compute_dtype=jnp.bfloat16):
    """x: (N, in_features); weight: (out_features, in_features); bias: (out_features,) or None."""
    n, k = x.shape
    m, k2 = weight.shape
    assert k == k2, "in_features mismatch"
    out_dtype = x.dtype

    # Alignment: lane dims multiples of 128; sublane dim multiple of 16 for bf16 operands.
    sub = 16 if jnp.dtype(compute_dtype).itemsize == 2 else 8
    n_al = _round_up(n, sub)
    m_al = _round_up(m, 128)
    k_al = _round_up(k, 128)

    tm = min(tm, n_al)
    tn = min(tn, m_al)
    tk = min(tk, k_al)
    # Keep tk a multiple of 256 when possible (full 2x256x256 MXU pushes on v6e/v7x).
    if tk >= 256:
        tk = (tk // 256) * 256

    # Megacore: expose >= 2 parallel (i, j) blocks when the dims allow it, otherwise one
    # TensorCore idles on v7x. Prefer splitting the lane (N) dim, else the sublane (M) dim.
    if (pl.cdiv(n_al, tm) * pl.cdiv(m_al, tn)) < 2:
        if m_al >= 2 * 128:
            tn = max(128, (m_al // 2 // 128) * 128)
        elif n_al >= 2 * sub:
            tm = max(sub, (n_al // 2 // sub) * sub)

    n_p = _round_up(n_al, tm)
    m_p = _round_up(m_al, tn)
    k_p = _round_up(k_al, tk)

    # Wrapper-side prep (one-time at weight-load in real inference):
    #   * cast x / W to bf16 for the MXU (f32 accumulation preserved in-kernel),
    #   * transpose W to (K, N) so the kernel streams lane-dense (tk, tn) tiles,
    #   * zero-pad (padded K contributes exactly 0; padded rows/cols sliced off at the end).
    x_c = x.astype(compute_dtype)
    x_p = x_c if (n_p, k_p) == (n, k) else jnp.pad(x_c, ((0, n_p - n), (0, k_p - k)))
    wt = weight.T.astype(compute_dtype)                      # (K, out_features)
    w_p = wt if (k_p, m_p) == (k, m) else jnp.pad(wt, ((0, k_p - k), (0, m_p - m)))
    if bias is None:
        b_p = jnp.zeros((1, m_p), dtype=jnp.float32)
    else:
        b2d = bias.astype(jnp.float32).reshape(1, m)
        b_p = b2d if m_p == m else jnp.pad(b2d, ((0, 0), (0, m_p - m)))

    grid = (n_p // tm, m_p // tn, k_p // tk)
    grid_m, grid_n, grid_k = grid

    # f32 outputs accumulate directly into the resident output block: no scratch needed.
    acc_in_output = (jnp.dtype(out_dtype) == jnp.dtype(jnp.float32))
    scratch_shapes = [] if acc_in_output else [pltpu.VMEM((tm, tn), jnp.float32)]

    # Skinny-M inference: the W stream is the only big streaming input; deepen its pipeline.
    use_w_triple = (grid_m == 1) and (grid_n * grid_k >= 3)
    if use_w_triple:
        w_spec = pl.BlockSpec((tk, tn), lambda i, j, kk: (kk, j),
                              pipeline_mode=pl.Buffered(3))
    else:
        w_spec = pl.BlockSpec((tk, tn), lambda i, j, kk: (kk, j))

    # VMEM budget from the actual tile working set, with a generation-aware cap.
    c_item = jnp.dtype(compute_dtype).itemsize
    o_item = jnp.dtype(out_dtype).itemsize
    w_bufs = 3 if use_w_triple else 2
    vmem_need = (
        2 * tm * tk * c_item              # double-buffered x tiles
        + w_bufs * tk * tn * c_item       # buffered W tiles
        + 2 * tn * 4                      # double-buffered bias tile (f32)
        + 2 * tm * tn * o_item            # double-buffered output tile
        + (0 if acc_in_output else tm * tn * 4)  # f32 accumulator scratch
        + (4 << 20)                       # headroom
    )
    vmem_limit = int(min(max(vmem_need, 32 * 1024 * 1024), _vmem_cap_bytes()))

    kernel = functools.partial(_linear_kernel, use_act=(act_func == "relu"))

    out_p = pl.pallas_call(
        kernel,
        out_shape=jax.ShapeDtypeStruct((n_p, m_p), out_dtype),
        grid=grid,
        in_specs=[
            pl.BlockSpec((tm, tk), lambda i, j, kk: (i, kk)),   # x tile (bf16)
            w_spec,                                             # W tile (K, N) (bf16)
            pl.BlockSpec((1, tn), lambda i, j, kk: (0, j)),     # bias tile (f32)
        ],
        out_specs=pl.BlockSpec((tm, tn), lambda i, j, kk: (i, j)),
        scratch_shapes=scratch_shapes,
        compiler_params=pltpu.CompilerParams(
            dimension_semantics=("parallel", "parallel", "arbitrary"),
            vmem_limit_bytes=vmem_limit,
        ),
    )(x_p, w_p, b_p)

    return out_p[:n, :m]


if __name__ == "__main__":
    # Deterministic synthetic parameters (PyTorch nn.Linear shapes), small demo sizes.
    in_features = 32
    out_features = 64
    batch = 8

    key = jax.random.PRNGKey(0)
    kx, kw, kb = jax.random.split(key, 3)

    # PyTorch default init: U(-1/sqrt(in), 1/sqrt(in)) — reproduced deterministically.
    bound = 1.0 / (in_features ** 0.5)
    x = jax.random.normal(kx, (batch, in_features), dtype=jnp.float32)
    weight = jax.random.uniform(kw, (out_features, in_features),
                                minval=-bound, maxval=bound, dtype=jnp.float32)
    bias = jax.random.uniform(kb, (out_features,),
                              minval=-bound, maxval=bound, dtype=jnp.float32)

    # Dropout is an eval-mode identity; nothing to compute in the kernel.
    # TODO(synk): training-mode dropout (pltpu.prng_seed + pltpu.stateful_bernoulli) not implemented.
    out = linear_layer(x, weight, bias, act_func="relu")
    out = jax.block_until_ready(out)

    # Reference #1: same bf16-operand / f32-accumulation recipe as the kernel (tight).
    xb = x.astype(jnp.bfloat16)
    wb = weight.astype(jnp.bfloat16)
    ref_bf16 = jnp.maximum(
        jnp.dot(xb, wb.T, preferred_element_type=jnp.float32) + bias, 0.0)
    # Reference #2: pure-f32 math (loose — quantifies the bf16 operand rounding only).
    ref_f32 = jnp.maximum(x @ weight.T + bias, 0.0)

    assert out.shape == ref_f32.shape, "shape mismatch vs reference"
    assert jnp.allclose(out, ref_bf16, atol=1e-3, rtol=1e-3), "mismatch vs bf16 reference"
    assert jnp.allclose(out, ref_f32, atol=5e-2, rtol=5e-2), "mismatch vs f32 reference"

    print("KERNEL_OK")
</pallas_src>

<mosaic_0001>
module attributes {stable_mosaic.version = 11 : i64} {
  func.func @_linear_kernel(%arg0: i32, %arg1: i32, %arg2: i32, %arg3: memref<16x128xbf16, #tpu.memory_space<vmem>>, %arg4: memref<128x128xbf16, #tpu.memory_space<vmem>>, %arg5: memref<1x128xf32, #tpu.memory_space<vmem>>, %arg6: memref<16x128xf32, #tpu.memory_space<vmem>>) attributes {dimension_semantics = [#tpu.dimension_semantics<parallel>, #tpu.dimension_semantics<parallel>, #tpu.dimension_semantics<arbitrary>], iteration_bounds = array<i64: 1, 1, 1>, scalar_prefetch = 0 : i64, scratch_operands = 0 : i64, tpu.core_type = #tpu.core_type<tc>, window_params = [{transform_indices = @transform_0, window_bounds = array<i64: 16, 128>}, {transform_indices = @transform_1, window_bounds = array<i64: 128, 128>}, {transform_indices = @transform_2, window_bounds = array<i64: 1, 128>}, {transform_indices = @transform_3, window_bounds = array<i64: 16, 128>}]} {
    %c0_i32 = arith.constant 0 : i32
    %0 = arith.cmpi eq, %arg2, %c0_i32 : i32
    %1 = arith.extui %0 : i1 to i32
    %c0_i32_0 = arith.constant 0 : i32
    %2 = arith.cmpi ne, %1, %c0_i32_0 : i32
    scf.if %2 {
      %cst_10 = arith.constant 0.000000e+00 : f32
      %12 = vector.broadcast %cst_10 : f32 to vector<16x128xf32>
      %c0_11 = arith.constant 0 : index
      %c0_12 = arith.constant 0 : index
      %13 = vector.load %arg6[%c0_11, %c0_12] : memref<16x128xf32, #tpu.memory_space<vmem>>, vector<16x128xf32>
      tpu.vector_store %arg6[%c0_11, %c0_12], %12 {strides = array<i32>} : memref<16x128xf32, #tpu.memory_space<vmem>>, vector<16x128xf32>,
    } else {
    }
    %c0 = arith.constant 0 : index
    %c0_1 = arith.constant 0 : index
    %3 = vector.load %arg6[%c0, %c0_1] : memref<16x128xf32, #tpu.memory_space<vmem>>, vector<16x128xf32>
    %c0_2 = arith.constant 0 : index
    %c0_3 = arith.constant 0 : index
    %4 = vector.load %arg3[%c0_2, %c0_3] : memref<16x128xbf16, #tpu.memory_space<vmem>>, vector<16x128xbf16>
    %c0_4 = arith.constant 0 : index
    %c0_5 = arith.constant 0 : index
    %5 = vector.load %arg4[%c0_4, %c0_5] : memref<128x128xbf16, #tpu.memory_space<vmem>>, vector<128x128xbf16>
    %cst = arith.constant dense<0.000000e+00> : vector<16x128xf32>
    %6 = tpu.matmul %4, %5, %cst {dimension_numbers = #tpu.dot_dimension_numbers<[1], [0], [0], [1], [0, 0, 1, 1], [], []>} : vector<16x128xbf16>, vector<128x128xbf16>, vector<16x128xf32> -> vector<16x128xf32>
    %7 = arith.addf %3, %6 : vector<16x128xf32>
    %c0_6 = arith.constant 0 : index
    %c0_7 = arith.constant 0 : index
    %8 = vector.load %arg6[%c0_6, %c0_7] : memref<16x128xf32, #tpu.memory_space<vmem>>, vector<16x128xf32>
    tpu.vector_store %arg6[%c0_6, %c0_7], %7 {strides = array<i32>} : memref<16x128xf32, #tpu.memory_space<vmem>>, vector<16x128xf32>,
    %c0_i32_8 = arith.constant 0 : i32
    %9 = arith.cmpi eq, %arg2, %c0_i32_8 : i32
    %10 = arith.extui %9 : i1 to i32
    %c0_i32_9 = arith.constant 0 : i32
    %11 = arith.cmpi ne, %10, %c0_i32_9 : i32
    scf.if %11 {
      %c0_10 = arith.constant 0 : index
      %c0_11 = arith.constant 0 : index
      %12 = vector.load %arg6[%c0_10, %c0_11] : memref<16x128xf32, #tpu.memory_space<vmem>>, vector<16x128xf32>
      %c0_12 = arith.constant 0 : index
      %c0_13 = arith.constant 0 : index
      %13 = vector.load %arg5[%c0_12, %c0_13] : memref<1x128xf32, #tpu.memory_space<vmem>>, vector<1x128xf32>
      %14 = vector.broadcast %13 : vector<1x128xf32> to vector<16x128xf32>
      %15 = arith.addf %12, %14 : vector<16x128xf32>
      %cst_14 = arith.constant 0.000000e+00 : f32
      %16 = vector.broadcast %cst_14 : f32 to vector<16x128xf32>
      %17 = arith.maximumf %15, %16 : vector<16x128xf32>
      %c0_15 = arith.constant 0 : index
      %c0_16 = arith.constant 0 : index
      %18 = vector.load %arg6[%c0_15, %c0_16] : memref<16x128xf32, #tpu.memory_space<vmem>>, vector<16x128xf32>
      tpu.vector_store %arg6[%c0_15, %c0_16], %17 {strides = array<i32>} : memref<16x128xf32, #tpu.memory_space<vmem>>, vector<16x128xf32>,
    } else {
    }
    return
  }
  func.func @transform_0(%arg0: i32, %arg1: i32, %arg2: i32) -> (i32, i32) {
    %c0_i32 = arith.constant 0 : i32
    return %arg0, %arg2 : i32, i32
  }
  func.func @transform_1(%arg0: i32, %arg1: i32, %arg2: i32) -> (i32, i32) {
    %c0_i32 = arith.constant 0 : i32
    return %arg2, %arg1 : i32, i32
  }
  func.func @transform_2(%arg0: i32, %arg1: i32, %arg2: i32) -> (i32, i32) {
    %c0_i32 = arith.constant 0 : i32
    %c0_i32_0 = arith.constant 0 : i32
    return %c0_i32, %arg1 : i32, i32
  }
  func.func @transform_3(%arg0: i32, %arg1: i32, %arg2: i32) -> (i32, i32) {
    %c0_i32 = arith.constant 0 : i32
    return %arg0, %arg1 : i32, i32
  }
}

</mosaic_0001>

<bundles_post_ra>
// kernel: tpu_custom_call.1
= control target key start
LH: loop header
LB: loop body
LE: loop exit
PB: predicated region body
PF: predicated region fallthrough
CT: control target
= control target key end

     0   :  { %8 = vsyncpa [#allocation3], 0  ;;  %s402_s0 = inlined_call_operand.hbm [shape: bf16[16,128], index: 0, kind: input, shape index: {}]   ;;  %s403_s1 = inlined_call_operand.hbm [shape: bf16[128,128], index: 1, kind: input, shape index: {}]   ;;  %s404_s2 = inlined_call_operand.vmem [shape: f32[1,128], index: 2, kind: input, shape index: {}]   ;;  %s405_s3 = inlined_call_operand.hbm [shape: f32[16,128], index: 3, kind: output, shape index: {}]  }
   0x1   :  { %9 = vsyncpa [#allocation6], 0 }
   0x2   :  { %10 = vsyncpa [#allocation4], 0  ;;  %s334_s12 = smov [#allocation2]   ;;  %s262_s16 = scalar_lea.hbm %s402_s0, 128 }
   0x3   :  { %s16_s13 = sshll.u32 %s334_s12, 4  ;;  %p263_p0 = scmp.ne.s32.totalorder %s402_s0, %s262_s16  ;;  %s17_s13 = int_to_ptr.vmem [resolvable:$true] %s16_s13 }
   0x4   :  { %p266_p1 = scmp.lt.u32.totalorder %s262_s16, %s402_s0 }
   0x6   :  { %p268_p2 = pnand %p266_p1, %p263_p0 }
   0x8   :  { %271 = shalt.err (!%p268_p2)
}
   0x9   :  { %s272_s21 = scalar_lea.vmem %s17_s13, 128  ;;  %p277_p4 = scmp.lt.s32.totalorder %s17_s13, %s17_s13 }
   0xa   :  { %p273_p3 = scmp.ne.s32.totalorder %s17_s13, %s272_s21  ;;  %p278_p5 = scmp.lt.s32.totalorder %s272_s21, %s272_s21 }
   0xc   :  { %p279_p6 = por %p278_p5, %p277_p4 }
   0xe   :  { %p280_p7 = pnand %p279_p6, %p273_p3 }
  0x10   :  { %283 = shalt.err (!%p280_p7)
}
  0x11   :  { %s335_s22 = smov 64   ;;  %s336_s23 = smov 4  }
  0x12   :  { %22 = dma.hbm_to_vmem [thread:$0]  %s402_s0, 128, %s17_s13, [#allocation3], %s335_s22, %s335_s22, %s336_s23  }
  0x13   :  { %s337_s26 = smov [#allocation5]   ;;  %s284_s30 = scalar_lea.hbm %s403_s1, 1024 }
  0x14   :  { %s28_s27 = sshll.u32 %s337_s26, 4  ;;  %p285_p8 = scmp.ne.s32.totalorder %s403_s1, %s284_s30  ;;  %s29_s27 = int_to_ptr.vmem [resolvable:$true] %s28_s27 }
  0x15   :  { %p288_p9 = scmp.lt.u32.totalorder %s284_s30, %s403_s1 }
  0x17   :  { %p290_p10 = pnand %p288_p9, %p285_p8 }
  0x19   :  { %293 = shalt.err (!%p290_p10)
}
  0x1a   :  { %s294_s8 = scalar_lea.vmem %s29_s27, 1024  ;;  %p299_p12 = scmp.lt.s32.totalorder %s29_s27, %s29_s27 }
  0x1b   :  { %p295_p11 = scmp.ne.s32.totalorder %s29_s27, %s294_s8  ;;  %p300_p13 = scmp.lt.s32.totalorder %s294_s8, %s294_s8 }
  0x1d   :  { %p301_p0 = por %p300_p13, %p299_p12 }
  0x1f   :  { %p302_p1 = pnand %p301_p0, %p295_p11 }
  0x21   :  { %305 = shalt.err (!%p302_p1)
}
  0x22   :  { %34 = dma.hbm_to_vmem [thread:$0]  %s403_s1, 1024, %s29_s27, [#allocation6], %s335_s22, %s335_s22, %s336_s23  }
  0x23   :  { %328 = dma.done.wait [#allocation3], 128  }
  0x24   :  { %329 = vsyncadd [#allocation3], 4294967168 }
  0x25   :  { %330 = dma.done.wait [#allocation6], 1024  }
  0x26   :  { %331 = vsyncadd [#allocation6], 4294966272  ;;  %v338_v0 = vmov 0.0   ;;  %vm339_vm0 = vmmov 0   ;;  %v253_v1 = vld [vmem:[#allocation5] sm:$0xff]   ;;  %v254_v2 = vld [vmem:[#allocation5 + $0x8] sm:$0xff]  }
  0x27   :  { %224 = vmatprep.subr.bf16.mxu0 %v338_v0  ;;  %240 = vmatprep.mubr.msk.bf16.mxu0 %vm339_vm0, %v338_v0  ;;  %v255_v3 = vld [vmem:[#allocation5 + $0x10] sm:$0xff]   ;;  %v256_v4 = vld [vmem:[#allocation5 + $0x18] sm:$0xff]   ;;  %v257_v5 = vld [vmem:[#allocation5 + $0x20] sm:$0xff]   ;;  %s340_s11 = smov [#allocation7]  }
  0x28   :  { %225 = vmatpush3.bf16.msra.mxu0 %v253_v1  ;;  %v258_v6 = vld [vmem:[#allocation5 + $0x28] sm:$0xff]   ;;  %v259_v7 = vld [vmem:[#allocation5 + $0x30] sm:$0xff]   ;;  %v260_v8 = vld [vmem:[#allocation5 + $0x38] sm:$0xff]   ;;  %s192_s12 = sshll.u32 %s340_s11, 4  ;;  %s193_s12 = int_to_ptr.vmem [resolvable:$true] %s192_s12 }
  0x29   :  { %226 = vmatprep.subr.bf16.mxu0 %v338_v0  ;;  %v261_v9 = vld [vmem:[#allocation2] sm:$0xff]   ;;  %s306_s13 = scalar_lea.vmem %s193_s12, 256  ;;  %p311_p3 = scmp.lt.s32.totalorder %s193_s12, %s193_s12 }
  0x2a   :  { %v214_v11 = vld [vmem:[%s404_s2] ss:$0 sm:$0xff]  ;;  %p307_p2 = scmp.ne.s32.totalorder %s193_s12, %s306_s13  ;;  %p312_p4 = scmp.lt.s32.totalorder %s306_s13, %s306_s13 }
  0x2c   :  { %227 = vmatpush3.bf16.msra.mxu0 %v254_v2  ;;  %p313_p5 = por %p312_p4, %p311_p3 }
  0x2d   :  { %228 = vmatprep.subr.bf16.mxu0 %v338_v0 }
  0x2e   :  { %p314_p6 = pnand %p313_p5, %p307_p2 }
  0x30   :  { %229 = vmatpush3.bf16.msra.mxu0 %v255_v3 }
  0x31   :  { %230 = vmatprep.subr.bf16.mxu0 %v338_v0 }
  0x34   :  { %231 = vmatpush3.bf16.msra.mxu0 %v256_v4 }
  0x35   :  { %232 = vmatprep.subr.bf16.mxu0 %v338_v0 }
  0x38   :  { %233 = vmatpush3.bf16.msra.mxu0 %v257_v5 }
  0x39   :  { %234 = vmatprep.subr.bf16.mxu0 %v338_v0 }
  0x3c   :  { %235 = vmatpush3.bf16.msra.mxu0 %v258_v6 }
  0x3d   :  { %236 = vmatprep.subr.bf16.mxu0 %v338_v0 }
  0x40   :  { %237 = vmatpush3.bf16.msra.mxu0 %v259_v7 }
  0x41   :  { %238 = vmatprep.subr.bf16.mxu0 %v338_v0 }
  0x44   :  { %239 = vmatpush3.bf16.msra.mxu0 %v260_v8 }
  0x47   :  { %241 = vmatmul.mubr.bf16.vlgmr.msra.gmra.mrb[0].mxu0 %v261_v9 }
 0x11a   :  { %v158_v10 = vpop.f32.mrb[0].mxu0 }
 0x11b   :  { %v242_v12 = vpop.f32.mrb[1].mxu0  ;;  %v181_v15 = vadd.f32 %v214_v11, %v158_v10 }
 0x11c   :  { %v161_v13 = vpop.f32.mrb[2].mxu0 }
 0x11d   :  { %v243_v14 = vpop.f32.mrb[3].mxu0  ;;  %v182_v16 = vadd.f32 %v214_v11, %v161_v13  ;;  %v183_v17 = vmax.f32 %v181_v15, 0.0 }
 0x11f   :  { %v184_v18 = vmax.f32 %v182_v16, 0.0  ;;  %185 = vst [vmem:[#allocation7] sm:$0xff] %v183_v17 }
 0x121   :  { %186 = vst [vmem:[#allocation7 + $0x8] sm:$0xff] %v184_v18 }
 0x122   :  { %317 = shalt.err (!%p314_p6)
}
 0x123   :  { %s318_s15 = scalar_lea.hbm %s405_s3, 256 }
 0x124   :  { %p319_p7 = scmp.ne.s32.totalorder %s405_s3, %s318_s15  ;;  %p322_p8 = scmp.lt.u32.totalorder %s318_s15, %s405_s3 }
 0x126   :  { %p324_p9 = pnand %p322_p8, %p319_p7 }
 0x128   :  { %327 = shalt.err (!%p324_p9)
}
 0x129   :  { %s341_s20 = smov 128   ;;  %s342_s21 = smov 8  }
 0x12a   :  { %198 = dma.vmem_to_hbm [thread:$0]  %s193_s12, 256, %s405_s3, [#allocation4], %s341_s20, %s341_s20, %s342_s21  }
 0x12b   :  { %332 = dma.done.wait [#allocation4], 256  }
 0x12c   :  { %333 = vsyncadd [#allocation4], 4294967040 }
 0x12d   :  { %202 = vsyncpa [#allocation3], 1 }
 0x12e   :  { %203 = vsyncpa [#allocation6], 1 }
 0x12f   :  { %204 = vsyncpa [#allocation4], 1 }

</bundles_post_ra>
